<compile_context>
chip_gen: v7x
topology: tpu7x:2x2x1
jax: 0.10.0
libtpu: 0.0.40
codegen_flags: <defaults>
</compile_context>

<pallas_src>
import functools

import jax
import jax.numpy as jnp
from jax.experimental import pallas as pl
from jax.experimental.pallas import tpu as pltpu

_EPS = 1e-5  # nn.GroupNorm default


def _round_up(x, m):
    return ((x + m - 1) // m) * m


# ----------------------------- Pallas kernels -----------------------------

def _stem_kernel(x_ref, w1_ref, b1_ref, w2_ref, b2_ref,
                 y1_ref, s_ref, stats_ref, *, tile_m, m_true, need_mask):
    # x_ref:  (1, Cin, TILE_M)   w1: (Cmid, Cin)  b1: (Cmid, 1)
    # w2: (Cmid, Cmid)  b2: (Cmid, 1)
    # y1_ref/s_ref: (1, Cmid, TILE_M)   stats_ref: (1, 8, 128) accumulator
    m = pl.program_id(1)

    x = x_ref[0]                                                   # (Cin, TILE_M)
    y1 = jnp.dot(w1_ref[...], x, preferred_element_type=jnp.float32) + b1_ref[...]
    s = jnp.dot(w2_ref[...], y1, preferred_element_type=jnp.float32) + b2_ref[...]

    if need_mask:
        # zero out padded columns so GroupNorm statistics stay exact
        col = jax.lax.broadcasted_iota(jnp.int32, (1, tile_m), 1) + m * tile_m
        valid = col < m_true
        y1 = jnp.where(valid, y1, 0.0)
        s = jnp.where(valid, s, 0.0)

    y1_ref[0] = y1
    s_ref[0] = s

    @pl.when(m == 0)
    def _():
        stats_ref[...] = jnp.zeros_like(stats_ref)

    # per-lane partial sums for GroupNorm(1, C): stats over all (C, M)
    c = s.shape[0]
    sr = s.reshape(c, tile_m // 128, 128)
    psum = jnp.sum(sr, axis=(0, 1))                                # (128,)
    psq = jnp.sum(sr * sr, axis=(0, 1))                            # (128,)
    upd = jnp.concatenate(
        [psum[None, :], psq[None, :], jnp.zeros((6, 128), jnp.float32)], axis=0)
    stats_ref[...] += upd[None]


def _head_kernel(y1_ref, s_ref, scale_ref, shift_ref, w3_ref, b3_ref, o_ref):
    # y1/s: (1, Cmid, TILE_M)  scale/shift: (1, Cmid, 1)
    # w3: (Cmid, 1)  b3: (1, 1)  o: (1, 1, TILE_M)
    y1 = y1_ref[0]                                                 # (Cmid, TILE_M)
    s = s_ref[0]
    gn = s * scale_ref[0] + shift_ref[0]                           # folded GroupNorm
    h = jnp.maximum(gn + y1, 0.0)                                  # residual + ReLU
    o = jnp.sum(h * w3_ref[...], axis=0, keepdims=True) + b3_ref[...]
    o_ref[0] = jax.nn.sigmoid(o)                                   # (1, TILE_M)


# ----------------------------- forward wrapper -----------------------------

def feat_volume_agg_forward(params, x):
    """x: (B, Cin, D, H, W) float32 -> (B, 1, D, H, W) float32."""
    B, Cin, D, H, W = x.shape
    M = D * H * W

    TILE_M = min(1024, _round_up(M, 128))
    Mp = _round_up(M, TILE_M)
    n_m = Mp // TILE_M
    need_mask = Mp != M

    xf = x.reshape(B, Cin, M).astype(jnp.float32)
    if need_mask:
        xf = jnp.pad(xf, ((0, 0), (0, 0), (0, Mp - M)))

    w1 = params["w1"].astype(jnp.float32)                          # (Cmid, Cin)
    b1 = params["b1"].astype(jnp.float32).reshape(-1, 1)           # (Cmid, 1)
    w2 = params["w2"].astype(jnp.float32)                          # (Cmid, Cmid)
    b2 = params["b2"].astype(jnp.float32).reshape(-1, 1)
    Cmid = w1.shape[0]

    # ---- stem: two pointwise convs + GroupNorm partial stats ----
    y1a, sa, stats = pl.pallas_call(
        functools.partial(_stem_kernel, tile_m=TILE_M, m_true=M,
                          need_mask=need_mask),
        out_shape=(
            jax.ShapeDtypeStruct((B, Cmid, Mp), jnp.float32),
            jax.ShapeDtypeStruct((B, Cmid, Mp), jnp.float32),
            jax.ShapeDtypeStruct((B, 8, 128), jnp.float32),
        ),
        grid=(B, n_m),
        in_specs=[
            pl.BlockSpec((1, Cin, TILE_M), lambda b, m: (b, 0, m)),
            pl.BlockSpec((Cmid, Cin), lambda b, m: (0, 0)),
            pl.BlockSpec((Cmid, 1), lambda b, m: (0, 0)),
            pl.BlockSpec((Cmid, Cmid), lambda b, m: (0, 0)),
            pl.BlockSpec((Cmid, 1), lambda b, m: (0, 0)),
        ],
        out_specs=(
            pl.BlockSpec((1, Cmid, TILE_M), lambda b, m: (b, 0, m)),
            pl.BlockSpec((1, Cmid, TILE_M), lambda b, m: (b, 0, m)),
            pl.BlockSpec((1, 8, 128), lambda b, m: (b, 0, 0)),
        ),
        compiler_params=pltpu.CompilerParams(
            dimension_semantics=("parallel", "arbitrary")),
    )(xf, w1, b1, w2, b2)

    # ---- fold GroupNorm(1, Cmid) stats into per-sample scale/shift (tiny) ----
    count = Cmid * M
    s_sum = jnp.sum(stats[:, 0, :], axis=-1)
    s_sq = jnp.sum(stats[:, 1, :], axis=-1)
    mean = s_sum / count
    var = s_sq / count - mean * mean
    rstd = jax.lax.rsqrt(var + _EPS)
    gamma = params["gn_gamma"].astype(jnp.float32)
    beta = params["gn_beta"].astype(jnp.float32)
    scale = gamma[None, :] * rstd[:, None]                         # (B, Cmid)
    shift = beta[None, :] - mean[:, None] * scale
    scale = scale.reshape(B, Cmid, 1)
    shift = shift.reshape(B, Cmid, 1)

    w3 = params["w3"].astype(jnp.float32).reshape(Cmid, 1)         # (Cmid, 1)
    b3 = params["b3"].astype(jnp.float32).reshape(1, 1)

    # ---- head: GN affine + residual + ReLU + 4->1 conv + sigmoid ----
    out = pl.pallas_call(
        _head_kernel,
        out_shape=jax.ShapeDtypeStruct((B, 1, Mp), jnp.float32),
        grid=(B, n_m),
        in_specs=[
            pl.BlockSpec((1, Cmid, TILE_M), lambda b, m: (b, 0, m)),
            pl.BlockSpec((1, Cmid, TILE_M), lambda b, m: (b, 0, m)),
            pl.BlockSpec((1, Cmid, 1), lambda b, m: (b, 0, 0)),
            pl.BlockSpec((1, Cmid, 1), lambda b, m: (b, 0, 0)),
            pl.BlockSpec((Cmid, 1), lambda b, m: (0, 0)),
            pl.BlockSpec((1, 1), lambda b, m: (0, 0)),
        ],
        out_specs=pl.BlockSpec((1, 1, TILE_M), lambda b, m: (b, 0, m)),
        compiler_params=pltpu.CompilerParams(
            dimension_semantics=("parallel", "parallel")),
    )(y1a, sa, scale, shift, w3, b3)

    out = out[:, :, :M].reshape(B, 1, D, H, W)
    return out


# ----------------------------- pure-JAX reference -----------------------------

def reference_forward(params, x):
    B, Cin, D, H, W = x.shape
    xf = x.reshape(B, Cin, -1).astype(jnp.float32)
    w1, b1 = params["w1"], params["b1"]
    w2, b2 = params["w2"], params["b2"]
    w3, b3 = params["w3"], params["b3"]
    gamma, beta = params["gn_gamma"], params["gn_beta"]

    y1 = jnp.einsum("oc,bcm->bom", w1, xf) + b1[None, :, None]
    s = jnp.einsum("oc,bcm->bom", w2, y1) + b2[None, :, None]
    mean = jnp.mean(s, axis=(1, 2), keepdims=True)
    var = jnp.mean((s - mean) ** 2, axis=(1, 2), keepdims=True)
    gn = (s - mean) * jax.lax.rsqrt(var + _EPS) * gamma[None, :, None] \
        + beta[None, :, None]
    h = jnp.maximum(gn + y1, 0.0)
    o = jnp.einsum("oc,bcm->bom", w3, h) + b3[None, :, None]
    return jax.nn.sigmoid(o).reshape(B, 1, D, H, W)


# ----------------------------- main -----------------------------

if __name__ == "__main__":
    key = jax.random.PRNGKey(0)
    k = jax.random.split(key, 8)

    B, Cin, D, H, W = 2, 32, 8, 16, 16
    Cmid = 4

    params = dict(
        w1=0.1 * jax.random.normal(k[0], (Cmid, Cin), jnp.float32),
        b1=0.1 * jax.random.normal(k[1], (Cmid,), jnp.float32),
        w2=0.1 * jax.random.normal(k[2], (Cmid, Cmid), jnp.float32),
        b2=0.1 * jax.random.normal(k[3], (Cmid,), jnp.float32),
        gn_gamma=1.0 + 0.1 * jax.random.normal(k[4], (Cmid,), jnp.float32),
        gn_beta=0.1 * jax.random.normal(k[5], (Cmid,), jnp.float32),
        w3=0.1 * jax.random.normal(k[6], (1, Cmid), jnp.float32),
        b3=0.1 * jax.random.normal(k[7], (1,), jnp.float32),
    )
    x = jax.random.normal(jax.random.PRNGKey(42), (B, Cin, D, H, W), jnp.float32)

    fwd = jax.jit(feat_volume_agg_forward)
    out = jax.block_until_ready(fwd(params, x))

    assert out.shape == (B, 1, D, H, W), out.shape
    assert bool(jnp.all(jnp.isfinite(out)))

    ref = reference_forward(params, x)
    max_err = float(jnp.max(jnp.abs(out - ref)))
    assert max_err < 1e-4, f"mismatch vs reference: {max_err}"

    print("KERNEL_OK")
</pallas_src>

<mosaic_0001>
module attributes {stable_mosaic.version = 11 : i64} {
  func.func @_stem_kernel(%arg0: i32, %arg1: i32, %arg2: memref<1x32x1024xf32, #tpu.memory_space<vmem>>, %arg3: memref<4x32xf32, #tpu.memory_space<vmem>>, %arg4: memref<4x1xf32, #tpu.memory_space<vmem>>, %arg5: memref<4x4xf32, #tpu.memory_space<vmem>>, %arg6: memref<4x1xf32, #tpu.memory_space<vmem>>, %arg7: memref<1x4x1024xf32, #tpu.memory_space<vmem>>, %arg8: memref<1x4x1024xf32, #tpu.memory_space<vmem>>, %arg9: memref<1x8x128xf32, #tpu.memory_space<vmem>>) attributes {dimension_semantics = [#tpu.dimension_semantics<parallel>, #tpu.dimension_semantics<arbitrary>], iteration_bounds = array<i64: 2, 2>, scalar_prefetch = 0 : i64, scratch_operands = 0 : i64, tpu.core_type = #tpu.core_type<tc>, window_params = [{transform_indices = @transform_0, window_bounds = array<i64: 1, 32, 1024>}, {pipeline_mode = #tpu.pipeline_mode<synchronous>, transform_indices = @transform_1, window_bounds = array<i64: 4, 32>}, {pipeline_mode = #tpu.pipeline_mode<synchronous>, transform_indices = @transform_2, window_bounds = array<i64: 4, 1>}, {pipeline_mode = #tpu.pipeline_mode<synchronous>, transform_indices = @transform_3, window_bounds = array<i64: 4, 4>}, {pipeline_mode = #tpu.pipeline_mode<synchronous>, transform_indices = @transform_4, window_bounds = array<i64: 4, 1>}, {transform_indices = @transform_5, window_bounds = array<i64: 1, 4, 1024>}, {transform_indices = @transform_6, window_bounds = array<i64: 1, 4, 1024>}, {transform_indices = @transform_7, window_bounds = array<i64: 1, 8, 128>}]} {
    %c0 = arith.constant 0 : index
    %c0_0 = arith.constant 0 : index
    %c0_1 = arith.constant 0 : index
    %0 = vector.load %arg2[%c0, %c0_0, %c0_1] : memref<1x32x1024xf32, #tpu.memory_space<vmem>>, vector<1x32x1024xf32>
    %1 = vector.shape_cast %0 : vector<1x32x1024xf32> to vector<32x1024xf32>
    %c0_2 = arith.constant 0 : index
    %c0_3 = arith.constant 0 : index
    %2 = vector.load %arg3[%c0_2, %c0_3] : memref<4x32xf32, #tpu.memory_space<vmem>>, vector<4x32xf32>
    %cst = arith.constant dense<0.000000e+00> : vector<4x1024xf32>
    %3 = tpu.matmul %2, %1, %cst {dimension_numbers = #tpu.dot_dimension_numbers<[1], [0], [0], [1], [0, 0, 1, 1], [], []>} : vector<4x32xf32>, vector<32x1024xf32>, vector<4x1024xf32> -> vector<4x1024xf32>
    %c0_4 = arith.constant 0 : index
    %c0_5 = arith.constant 0 : index
    %4 = vector.load %arg4[%c0_4, %c0_5] : memref<4x1xf32, #tpu.memory_space<vmem>>, vector<4x1xf32>
    %5 = vector.broadcast %4 : vector<4x1xf32> to vector<4x1024xf32>
    %6 = arith.addf %3, %5 : vector<4x1024xf32>
    %c0_6 = arith.constant 0 : index
    %c0_7 = arith.constant 0 : index
    %7 = vector.load %arg5[%c0_6, %c0_7] : memref<4x4xf32, #tpu.memory_space<vmem>>, vector<4x4xf32>
    %cst_8 = arith.constant dense<0.000000e+00> : vector<4x1024xf32>
    %8 = tpu.matmul %7, %6, %cst_8 {dimension_numbers = #tpu.dot_dimension_numbers<[1], [0], [0], [1], [0, 0, 1, 1], [], []>} : vector<4x4xf32>, vector<4x1024xf32>, vector<4x1024xf32> -> vector<4x1024xf32>
    %c0_9 = arith.constant 0 : index
    %c0_10 = arith.constant 0 : index
    %9 = vector.load %arg6[%c0_9, %c0_10] : memref<4x1xf32, #tpu.memory_space<vmem>>, vector<4x1xf32>
    %10 = vector.broadcast %9 : vector<4x1xf32> to vector<4x1024xf32>
    %11 = arith.addf %8, %10 : vector<4x1024xf32>
    %c0_11 = arith.constant 0 : index
    %c0_12 = arith.constant 0 : index
    %c0_13 = arith.constant 0 : index
    %12 = vector.load %arg7[%c0_11, %c0_12, %c0_13] : memref<1x4x1024xf32, #tpu.memory_space<vmem>>, vector<1x4x1024xf32>
    %13 = vector.shape_cast %12 : vector<1x4x1024xf32> to vector<4x1024xf32>
    %14 = vector.shape_cast %6 : vector<4x1024xf32> to vector<1x4x1024xf32>
    tpu.vector_store %arg7[%c0_11, %c0_12, %c0_13], %14 {strides = array<i32>} : memref<1x4x1024xf32, #tpu.memory_space<vmem>>, vector<1x4x1024xf32>,
    %c0_14 = arith.constant 0 : index
    %c0_15 = arith.constant 0 : index
    %c0_16 = arith.constant 0 : index
    %15 = vector.load %arg8[%c0_14, %c0_15, %c0_16] : memref<1x4x1024xf32, #tpu.memory_space<vmem>>, vector<1x4x1024xf32>
    %16 = vector.shape_cast %15 : vector<1x4x1024xf32> to vector<4x1024xf32>
    %17 = vector.shape_cast %11 : vector<4x1024xf32> to vector<1x4x1024xf32>
    tpu.vector_store %arg8[%c0_14, %c0_15, %c0_16], %17 {strides = array<i32>} : memref<1x4x1024xf32, #tpu.memory_space<vmem>>, vector<1x4x1024xf32>,
    %c0_i32 = arith.constant 0 : i32
    %18 = arith.cmpi eq, %arg1, %c0_i32 : i32
    %19 = arith.extui %18 : i1 to i32
    %c0_i32_17 = arith.constant 0 : i32
    %20 = arith.cmpi ne, %19, %c0_i32_17 : i32
    scf.if %20 {
      %cst_27 = arith.constant 0.000000e+00 : f32
      %33 = vector.broadcast %cst_27 : f32 to vector<1x8x128xf32>
      %c0_28 = arith.constant 0 : index
      %c0_29 = arith.constant 0 : index
      %c0_30 = arith.constant 0 : index
      %34 = vector.load %arg9[%c0_28, %c0_29, %c0_30] : memref<1x8x128xf32, #tpu.memory_space<vmem>>, vector<1x8x128xf32>
      tpu.vector_store %arg9[%c0_28, %c0_29, %c0_30], %33 {strides = array<i32>} : memref<1x8x128xf32, #tpu.memory_space<vmem>>, vector<1x8x128xf32>,
    } else {
    }
    %21 = vector.shape_cast %11 : vector<4x1024xf32> to vector<4x8x128xf32>
    %cst_18 = arith.constant dense<0.000000e+00> : vector<128xf32>
    %22 = vector.multi_reduction <add>, %21, %cst_18 [0, 1] : vector<4x8x128xf32> to vector<128xf32>
    %23 = arith.mulf %21, %21 : vector<4x8x128xf32>
    %cst_19 = arith.constant dense<0.000000e+00> : vector<128xf32>
    %24 = vector.multi_reduction <add>, %23, %cst_19 [0, 1] : vector<4x8x128xf32> to vector<128xf32>
    %25 = vector.shape_cast %22 : vector<128xf32> to vector<1x128xf32>
    %26 = vector.shape_cast %24 : vector<128xf32> to vector<1x128xf32>
    %cst_20 = arith.constant 0.000000e+00 : f32
    %27 = vector.broadcast %cst_20 : f32 to vector<6x128xf32>
    %28 = tpu.concatenate %25, %26, %27 in 0 : vector<1x128xf32>, vector<1x128xf32>, vector<6x128xf32> -> vector<8x128xf32>
    %c0_21 = arith.constant 0 : index
    %c0_22 = arith.constant 0 : index
    %c0_23 = arith.constant 0 : index
    %29 = vector.load %arg9[%c0_21, %c0_22, %c0_23] : memref<1x8x128xf32, #tpu.memory_space<vmem>>, vector<1x8x128xf32>
    %30 = vector.shape_cast %28 : vector<8x128xf32> to vector<1x8x128xf32>
    %31 = arith.addf %29, %30 : vector<1x8x128xf32>
    %c0_24 = arith.constant 0 : index
    %c0_25 = arith.constant 0 : index
    %c0_26 = arith.constant 0 : index
    %32 = vector.load %arg9[%c0_24, %c0_25, %c0_26] : memref<1x8x128xf32, #tpu.memory_space<vmem>>, vector<1x8x128xf32>
    tpu.vector_store %arg9[%c0_24, %c0_25, %c0_26], %31 {strides = array<i32>} : memref<1x8x128xf32, #tpu.memory_space<vmem>>, vector<1x8x128xf32>,
    return
  }
  func.func @transform_0(%arg0: i32, %arg1: i32) -> (i32, i32, i32) {
    %c0_i32 = arith.constant 0 : i32
    %c0_i32_0 = arith.constant 0 : i32
    return %arg0, %c0_i32, %arg1 : i32, i32, i32
  }
  func.func @transform_1(%arg0: i32, %arg1: i32) -> (i32, i32) {
    %c0_i32 = arith.constant 0 : i32
    %c0_i32_0 = arith.constant 0 : i32
    %c0_i32_1 = arith.constant 0 : i32
    return %c0_i32, %c0_i32_0 : i32, i32
  }
  func.func @transform_2(%arg0: i32, %arg1: i32) -> (i32, i32) {
    %c0_i32 = arith.constant 0 : i32
    %c0_i32_0 = arith.constant 0 : i32
    %c0_i32_1 = arith.constant 0 : i32
    return %c0_i32, %c0_i32_0 : i32, i32
  }
  func.func @transform_3(%arg0: i32, %arg1: i32) -> (i32, i32) {
    %c0_i32 = arith.constant 0 : i32
    %c0_i32_0 = arith.constant 0 : i32
    %c0_i32_1 = arith.constant 0 : i32
    return %c0_i32, %c0_i32_0 : i32, i32
  }
  func.func @transform_4(%arg0: i32, %arg1: i32) -> (i32, i32) {
    %c0_i32 = arith.constant 0 : i32
    %c0_i32_0 = arith.constant 0 : i32
    %c0_i32_1 = arith.constant 0 : i32
    return %c0_i32, %c0_i32_0 : i32, i32
  }
  func.func @transform_5(%arg0: i32, %arg1: i32) -> (i32, i32, i32) {
    %c0_i32 = arith.constant 0 : i32
    %c0_i32_0 = arith.constant 0 : i32
    return %arg0, %c0_i32, %arg1 : i32, i32, i32
  }
  func.func @transform_6(%arg0: i32, %arg1: i32) -> (i32, i32, i32) {
    %c0_i32 = arith.constant 0 : i32
    %c0_i32_0 = arith.constant 0 : i32
    return %arg0, %c0_i32, %arg1 : i32, i32, i32
  }
  func.func @transform_7(%arg0: i32, %arg1: i32) -> (i32, i32, i32) {
    %c0_i32 = arith.constant 0 : i32
    %c0_i32_0 = arith.constant 0 : i32
    %c0_i32_1 = arith.constant 0 : i32
    return %arg0, %c0_i32, %c0_i32_0 : i32, i32, i32
  }
}

module attributes {stable_mosaic.version = 11 : i64} {
  func.func @_head_kernel(%arg0: i32, %arg1: i32, %arg2: memref<1x4x1024xf32, #tpu.memory_space<vmem>>, %arg3: memref<1x4x1024xf32, #tpu.memory_space<vmem>>, %arg4: memref<1x4x1xf32, #tpu.memory_space<vmem>>, %arg5: memref<1x4x1xf32, #tpu.memory_space<vmem>>, %arg6: memref<4x1xf32, #tpu.memory_space<vmem>>, %arg7: memref<1x1xf32, #tpu.memory_space<vmem>>, %arg8: memref<1x1x1024xf32, #tpu.memory_space<vmem>>) attributes {dimension_semantics = [#tpu.dimension_semantics<parallel>, #tpu.dimension_semantics<parallel>], iteration_bounds = array<i64: 2, 2>, scalar_prefetch = 0 : i64, scratch_operands = 0 : i64, tpu.core_type = #tpu.core_type<tc>, window_params = [{transform_indices = @transform_0, window_bounds = array<i64: 1, 4, 1024>}, {transform_indices = @transform_1, window_bounds = array<i64: 1, 4, 1024>}, {transform_indices = @transform_2, window_bounds = array<i64: 1, 4, 1>}, {transform_indices = @transform_3, window_bounds = array<i64: 1, 4, 1>}, {pipeline_mode = #tpu.pipeline_mode<synchronous>, transform_indices = @transform_4, window_bounds = array<i64: 4, 1>}, {pipeline_mode = #tpu.pipeline_mode<synchronous>, transform_indices = @transform_5, window_bounds = array<i64: 1, 1>}, {transform_indices = @transform_6, window_bounds = array<i64: 1, 1, 1024>}]} {
    %c0 = arith.constant 0 : index
    %c0_0 = arith.constant 0 : index
    %c0_1 = arith.constant 0 : index
    %0 = vector.load %arg2[%c0, %c0_0, %c0_1] : memref<1x4x1024xf32, #tpu.memory_space<vmem>>, vector<1x4x1024xf32>
    %1 = vector.shape_cast %0 : vector<1x4x1024xf32> to vector<4x1024xf32>
    %c0_2 = arith.constant 0 : index
    %c0_3 = arith.constant 0 : index
    %c0_4 = arith.constant 0 : index
    %2 = vector.load %arg3[%c0_2, %c0_3, %c0_4] : memref<1x4x1024xf32, #tpu.memory_space<vmem>>, vector<1x4x1024xf32>
    %3 = vector.shape_cast %2 : vector<1x4x1024xf32> to vector<4x1024xf32>
    %c0_5 = arith.constant 0 : index
    %c0_6 = arith.constant 0 : index
    %c0_7 = arith.constant 0 : index
    %4 = vector.load %arg4[%c0_5, %c0_6, %c0_7] : memref<1x4x1xf32, #tpu.memory_space<vmem>>, vector<1x4x1xf32>
    %5 = vector.shape_cast %4 : vector<1x4x1xf32> to vector<4x1xf32>
    %6 = vector.broadcast %5 : vector<4x1xf32> to vector<4x1024xf32>
    %7 = arith.mulf %3, %6 : vector<4x1024xf32>
    %c0_8 = arith.constant 0 : index
    %c0_9 = arith.constant 0 : index
    %c0_10 = arith.constant 0 : index
    %8 = vector.load %arg5[%c0_8, %c0_9, %c0_10] : memref<1x4x1xf32, #tpu.memory_space<vmem>>, vector<1x4x1xf32>
    %9 = vector.shape_cast %8 : vector<1x4x1xf32> to vector<4x1xf32>
    %10 = vector.broadcast %9 : vector<4x1xf32> to vector<4x1024xf32>
    %11 = arith.addf %7, %10 : vector<4x1024xf32>
    %12 = arith.addf %11, %1 : vector<4x1024xf32>
    %cst = arith.constant 0.000000e+00 : f32
    %13 = vector.broadcast %cst : f32 to vector<4x1024xf32>
    %14 = arith.maximumf %12, %13 : vector<4x1024xf32>
    %c0_11 = arith.constant 0 : index
    %c0_12 = arith.constant 0 : index
    %15 = vector.load %arg6[%c0_11, %c0_12] : memref<4x1xf32, #tpu.memory_space<vmem>>, vector<4x1xf32>
    %16 = vector.broadcast %15 : vector<4x1xf32> to vector<4x1024xf32>
    %17 = arith.mulf %14, %16 : vector<4x1024xf32>
    %cst_13 = arith.constant dense<0.000000e+00> : vector<1024xf32>
    %18 = vector.multi_reduction <add>, %17, %cst_13 [0] : vector<4x1024xf32> to vector<1024xf32>
    %19 = vector.shape_cast %18 : vector<1024xf32> to vector<1x1024xf32>
    %c0_14 = arith.constant 0 : index
    %c0_15 = arith.constant 0 : index
    %20 = vector.load %arg7[%c0_14, %c0_15] : memref<1x1xf32, #tpu.memory_space<vmem>>, vector<1x1xf32>
    %21 = vector.broadcast %20 : vector<1x1xf32> to vector<1x1024xf32>
    %22 = arith.addf %19, %21 : vector<1x1024xf32>
    %23 = arith.negf %22 : vector<1x1024xf32>
    %24 = math.exp %23 : vector<1x1024xf32>
    %cst_16 = arith.constant 1.000000e+00 : f32
    %25 = vector.broadcast %cst_16 : f32 to vector<1x1024xf32>
    %26 = arith.addf %25, %24 : vector<1x1024xf32>
    %27 = arith.divf %25, %26 : vector<1x1024xf32>
    %c0_17 = arith.constant 0 : index
    %c0_18 = arith.constant 0 : index
    %c0_19 = arith.constant 0 : index
    %28 = vector.load %arg8[%c0_17, %c0_18, %c0_19] : memref<1x1x1024xf32, #tpu.memory_space<vmem>>, vector<1x1x1024xf32>
    %29 = vector.shape_cast %28 : vector<1x1x1024xf32> to vector<1x1024xf32>
    %30 = vector.shape_cast %27 : vector<1x1024xf32> to vector<1x1x1024xf32>
    tpu.vector_store %arg8[%c0_17, %c0_18, %c0_19], %30 {strides = array<i32>} : memref<1x1x1024xf32, #tpu.memory_space<vmem>>, vector<1x1x1024xf32>,
    return
  }
  func.func @transform_0(%arg0: i32, %arg1: i32) -> (i32, i32, i32) {
    %c0_i32 = arith.constant 0 : i32
    %c0_i32_0 = arith.constant 0 : i32
    return %arg0, %c0_i32, %arg1 : i32, i32, i32
  }
  func.func @transform_1(%arg0: i32, %arg1: i32) -> (i32, i32, i32) {
    %c0_i32 = arith.constant 0 : i32
    %c0_i32_0 = arith.constant 0 : i32
    return %arg0, %c0_i32, %arg1 : i32, i32, i32
  }
  func.func @transform_2(%arg0: i32, %arg1: i32) -> (i32, i32, i32) {
    %c0_i32 = arith.constant 0 : i32
    %c0_i32_0 = arith.constant 0 : i32
    %c0_i32_1 = arith.constant 0 : i32
    return %arg0, %c0_i32, %c0_i32_0 : i32, i32, i32
  }
  func.func @transform_3(%arg0: i32, %arg1: i32) -> (i32, i32, i32) {
    %c0_i32 = arith.constant 0 : i32
    %c0_i32_0 = arith.constant 0 : i32
    %c0_i32_1 = arith.constant 0 : i32
    return %arg0, %c0_i32, %c0_i32_0 : i32, i32, i32
  }
  func.func @transform_4(%arg0: i32, %arg1: i32) -> (i32, i32) {
    %c0_i32 = arith.constant 0 : i32
    %c0_i32_0 = arith.constant 0 : i32
    %c0_i32_1 = arith.constant 0 : i32
    return %c0_i32, %c0_i32_0 : i32, i32
  }
  func.func @transform_5(%arg0: i32, %arg1: i32) -> (i32, i32) {
    %c0_i32 = arith.constant 0 : i32
    %c0_i32_0 = arith.constant 0 : i32
    %c0_i32_1 = arith.constant 0 : i32
    return %c0_i32, %c0_i32_0 : i32, i32
  }
  func.func @transform_6(%arg0: i32, %arg1: i32) -> (i32, i32, i32) {
    %c0_i32 = arith.constant 0 : i32
    %c0_i32_0 = arith.constant 0 : i32
    return %arg0, %c0_i32, %arg1 : i32, i32, i32
  }
}

</mosaic_0001>

<bundles_post_ra>
// kernel: feat_volume_agg_forward.3
= control target key start
LH: loop header
LB: loop body
LE: loop exit
PB: predicated region body
PF: predicated region fallthrough
CT: control target
= control target key end

     0   :  { %s931_s23 = smov 0   ;;  %s933_s24 = smov 0   ;;  %s1024_s0 = inlined_call_operand.vmem [shape: f32[2,4,2048], index: 0, kind: input, shape index: {}]   ;;  %s1025_s1 = inlined_call_operand.vmem [shape: f32[2,4,2048], index: 1, kind: input, shape index: {}]   ;;  %s1026_s2 = inlined_call_operand.vmem [shape: f32[2,4,1], index: 2, kind: input, shape index: {}]   ;;  %s1027_s3 = inlined_call_operand.vmem [shape: f32[2,4,1], index: 3, kind: input, shape index: {}]   ;;  %s1028_s4 = inlined_call_operand.vmem [shape: f32[4,1], index: 4, kind: input, shape index: {}]   ;;  %s1029_s5 = inlined_call_operand.<no memory space> [shape: f32[1,1], index: 5, kind: input, shape index: {}]   ;;  %s1030_s6 = inlined_call_operand.vmem [shape: f32[2,1,2048], index: 6, kind: output, shape index: {}]  }
   0x1   :  { %v11_v0 = vstv %s1029_s5  ;;  %s935_s25 = smov 0   ;;  %s937_s26 = smov 0  }
   0x2   :  { %12 = vst [vmem:[#allocation2] sm:$0x1] %v11_v0  ;;  %s939_s27 = smov 0  }
   0x3 LB: > { %s27_s5 = sadd.s32 1, %s880_s25  ;;  %s30_s28 = sadd.s32 1, %s884_s26  ;;  %s888_s27 = sphi %s939_s27, %s18_s27   ;;  %s884_s26 = sphi %s937_s26, %s1034_s26   ;;  %s880_s25 = sphi %s935_s25, %s1033_s25   ;;  %s876_s24 = sphi %s933_s24, %s1032_s24   ;;  %s872_s23 = sphi %s931_s23, %s1031_s23  }
   0x4   : > { %p28_p0 = scmp.ge.s32.totalorder %s27_s5, 2  ;;  %p752_p1 = scmp.ge.s32.totalorder %s888_s27, 1 }
   0x5   : > { %p270_p2 = scmp.lt.s32.totalorder %s888_s27, 5 }
   0x6   : > { %s1036_s5 = smov (%p28_p0, %s27_s5), 0  ;;  %s1038_s28 = smov (!%p28_p0, %s30_s28), %s884_s26 }
   0x7   : > { %p271_p3 = pnand %p752_p1, %p270_p2  ;;  %p32_p4 = scmp.ge.s32.totalorder %s1038_s28, 2 }
   0x8   : > { %p325_p5 = scmp.lt.s32.totalorder (!%p271_p3), %s876_s24, 1  ;;  %v411_v1 = vld [vmem:[%s1028_s4] sm:$0xf] (!%p271_p3)  ;;  %v890_v2 = vmov (!%p271_p3), 0   ;;  %s753_s14 = sshll.u32 (!%p271_p3), %s872_s23, 3  ;;  %v377_v8 = vlaneseq (!%p271_p3)  ;;  %vm440_vm0 = vcmask (!%p271_p3), 1043456  }
   0x9   : > { %s1040_s28 = smov (%p32_p4, %s1038_s28), 0  ;;  %274 = sbr.rel (%p271_p3) target bundleno = 222 (0xde), region = 44 }
   0xa   : > { %816 = vset.pattern.permute.xlu0 (!%p271_p3), %v890_v2  ;;  %817 = vset.pattern.permute.xlu1 (!%p271_p3), %v890_v2  ;;  %v497_v3 = vld [vmem:[#allocation2] sm:$0x1] (!%p271_p3)  ;;  %p327_p6 = scmp.lt.s32.totalorder (!%p271_p3), %s753_s14, 15  ;;  %v891_v6 = vmov (!%p271_p3), 839922192   ;;  %v975_v10 = vshrl.u32 (!%p271_p3), %v377_v8, 7 }
   0xb   : > { %414 = vperm.xlu1 (!%p271_p3), %817, %v411_v1   ;;  %v375_v7 = vunpack.c.l.s4 (!%p271_p3), %v891_v6 }
   0xc   : > { %v505_v38 = vsub.s32 (!%p271_p3), 0, %v975_v10 }
   0xd   : > { %v376_v9 = vunpack.c.0.s8 (!%p271_p3), %v375_v7 }
   0xf   : > { %500 = vperm.xlu1 (!%p271_p3), %817, %v497_v3   ;;  %v379_v11 = vsub.s32 (!%p271_p3), %v376_v9, %v975_v10 }
  0x10   : > { %s1042_s24 = smov (!%p325_p5, %s876_s24), 1  ;;  %s1044_s14 = smov (!%p327_p6, %s753_s14), 15 }
  0x11   : > { %s759_s7 = sshll.u32 %s1042_s24, 2  ;;  %s754_s15 = sshll.u32 %s1042_s24, 4 }
  0x12   : > { %s347_s10 = scalar_lea.vmem %s1026_s2, %s759_s7  ;;  %s351_s13 = scalar_lea.vmem %s1027_s3, %s759_s7 }
  0x13   : > { %v369_v4 = vld [vmem:[%s347_s10] sm:$0xf]  ;;  %s973_s16 = sadd.s32 %s754_s15, %s1044_s14 }
  0x14   : > { %372 = vperm.xlu0 %816, %v369_v4   ;;  %v386_v5 = vld [vmem:[%s351_s13] sm:$0xf]  ;;  %s755_s17 = sshll.u32 %s973_s16, 2  ;;  %s359_s30 = scalar_lea.vmem %s1030_s6, %s973_s16 }
  0x15   : > { %s342_s20 = scalar_lea.vmem %s1025_s1, %s755_s17  ;;  %s332_s23 = scalar_lea.vmem %s1024_s0, %s755_s17 }
  0x16   : > { %v365_v13 = vld [vmem:[%s342_s20] sm:$0xff]  ;;  %v366_v15 = vld [vmem:[%s342_s20 + $0x8] sm:$0xff]  ;;  %v367_v16 = vld [vmem:[%s342_s20 + $0x10] sm:$0xff] }
  0x17   : > { %v368_v17 = vld [vmem:[%s342_s20 + $0x18] sm:$0xff]  ;;  %v361_v23 = vld [vmem:[%s332_s23] sm:$0xff]  ;;  %v362_v26 = vld [vmem:[%s332_s23 + $0x8] sm:$0xff] }
  0x18   : > { %389 = vperm.xlu0 %816, %v386_v5   ;;  %v363_v27 = vld [vmem:[%s332_s23 + $0x10] sm:$0xff]  ;;  %v364_v28 = vld [vmem:[%s332_s23 + $0x18] sm:$0xff] }
  0x8a   : > { %v415_v25 = vpop.permute.xlu1 %414 }
  0x8b   : > { %v422_v33 = vrot.slane %v415_v25, %v379_v11 }
  0x8e   : > { %v501_v43 = vpop.permute.xlu1 %500 }
  0x8f   : > { %v986_v48 = vrot.slane %v501_v43, %v505_v38 }
  0x93   : > { %v373_v12 = vpop.permute.xlu0 %372 }
  0x94   : > { %v380_v14 = vrot.slane %v373_v12, %v379_v11 }
  0x96   : > { %v382_v18 = vmul.f32 %v380_v14, %v365_v13  ;;  %v383_v20 = vmul.f32 %v380_v14, %v366_v15  ;;  %v384_v21 = vmul.f32 %v380_v14, %v367_v16  ;;  %v385_v22 = vmul.f32 %v380_v14, %v368_v17 }
  0x97   : > { %v390_v19 = vpop.permute.xlu0 %389 }
  0x98   : > { %v397_v24 = vrot.slane %v390_v19, %v379_v11 }
  0x9a   : > { %v399_v29 = vadd.f32 %v397_v24, %v382_v18  ;;  %v400_v30 = vadd.f32 %v397_v24, %v383_v20  ;;  %v401_v31 = vadd.f32 %v397_v24, %v384_v21  ;;  %v402_v32 = vadd.f32 %v397_v24, %v385_v22 }
  0x9c   : > { %v403_v34 = vadd.f32 %v399_v29, %v361_v23  ;;  %v404_v35 = vadd.f32 %v400_v30, %v362_v26  ;;  %v405_v36 = vadd.f32 %v401_v31, %v363_v27  ;;  %v406_v37 = vadd.f32 %v402_v32, %v364_v28 }
  0x9e   : > { %v407_v39 = vmax.f32 %v403_v34, 0.0  ;;  %v408_v40 = vmax.f32 %v404_v35, 0.0  ;;  %v409_v41 = vmax.f32 %v405_v36, 0.0  ;;  %v410_v42 = vmax.f32 %v406_v37, 0.0 }
  0xa0   : > { %v424_v44 = vmul.f32 %v422_v33, %v407_v39  ;;  %v425_v45 = vmul.f32 %v422_v33, %v408_v40  ;;  %v426_v46 = vmul.f32 %v422_v33, %v409_v41  ;;  %v427_v47 = vmul.f32 %v422_v33, %v410_v42 }
  0xa2   : > { %v432_v49 = vcombine.high %v424_v44, %v424_v44  ;;  %v433_v50 = vcombine.high %v425_v45, %v425_v45  ;;  %v434_v51 = vcombine.high %v426_v46, %v426_v46  ;;  %v435_v52 = vcombine.high %v427_v47, %v427_v47 }
  0xa3   : > { %v441_v53 = vsel %vm440_vm0, %v424_v44, 0.0  ;;  %v455_v54 = vsel %vm440_vm0, %v425_v45, 0.0  ;;  %v469_v55 = vsel %vm440_vm0, %v426_v46, 0.0  ;;  %v483_v56 = vsel %vm440_vm0, %v427_v47, 0.0 }
  0xa4   : > { %v442_v57 = vrot.slane %v441_v53, 4  ;;  %v448_v58 = vsel %vm440_vm0, %v432_v49, 0.0  ;;  %v456_v59 = vrot.slane %v455_v54, 4  ;;  %v462_v60 = vsel %vm440_vm0, %v433_v50, 0.0 }
  0xa5   : > { %v449_v61 = vrot.slane %v448_v58, 4  ;;  %v463_v62 = vrot.slane %v462_v60, 4  ;;  %v470_v63 = vrot.slane %v469_v55, 4  ;;  %v476_v0 = vsel %vm440_vm0, %v434_v51, 0.0 }
  0xa6   : > { %v443_v1 = vadd.f32 %v442_v57, %v441_v53  ;;  %v457_v2 = vadd.f32 %v456_v59, %v455_v54  ;;  %v477_v3 = vrot.slane %v476_v0, 4  ;;  %v484_v4 = vrot.slane %v483_v56, 4 }
  0xa7   : > { %v450_v5 = vadd.f32 %v449_v61, %v448_v58  ;;  %v464_v6 = vadd.f32 %v463_v62, %v462_v60  ;;  %v471_v7 = vadd.f32 %v470_v63, %v469_v55  ;;  %v490_v8 = vsel %vm440_vm0, %v435_v52, 0.0 }
  0xa8   : > { %v444_v9 = vrot.slane %v443_v1, 2  ;;  %v458_v11 = vrot.slane %v457_v2, 2  ;;  %v478_v12 = vadd.f32 %v477_v3, %v476_v0  ;;  %v485_v13 = vadd.f32 %v484_v4, %v483_v56 }
  0xa9   : > { %v451_v14 = vrot.slane %v450_v5, 2  ;;  %v465_v15 = vrot.slane %v464_v6, 2  ;;  %v472_v16 = vrot.slane %v471_v7, 2  ;;  %v491_v17 = vrot.slane %v490_v8, 4 }
  0xaa   : > { %v445_v18 = vadd.f32 %v444_v9, %v443_v1  ;;  %v459_v19 = vadd.f32 %v458_v11, %v457_v2  ;;  %v479_v20 = vrot.slane %v478_v12, 2  ;;  %v486_v21 = vrot.slane %v485_v13, 2 }
  0xab   : > { %v452_v22 = vadd.f32 %v451_v14, %v450_v5  ;;  %v466_v23 = vadd.f32 %v465_v15, %v464_v6  ;;  %v473_v24 = vadd.f32 %v472_v16, %v471_v7  ;;  %v492_v25 = vadd.f32 %v491_v17, %v490_v8 }
  0xac   : > { %v446_v26 = vrot.slane %v445_v18, 1  ;;  %v460_v27 = vrot.slane %v459_v19, 1  ;;  %v480_v28 = vadd.f32 %v479_v20, %v478_v12  ;;  %v487_v29 = vadd.f32 %v486_v21, %v485_v13 }
  0xad   : > { %v453_v30 = vrot.slane %v452_v22, 1  ;;  %v467_v31 = vrot.slane %v466_v23, 1  ;;  %v474_v32 = vrot.slane %v473_v24, 1  ;;  %v493_v33 = vrot.slane %v492_v25, 2 }
  0xae   : > { %v447_v34 = vadd.f32 %v446_v26, %v445_v18  ;;  %v461_v35 = vadd.f32 %v460_v27, %v459_v19  ;;  %v481_v36 = vrot.slane %v480_v28, 1  ;;  %v488_v37 = vrot.slane %v487_v29, 1 }
  0xaf   : > { %v454_v38 = vadd.f32 %v453_v30, %v452_v22  ;;  %v468_v39 = vadd.f32 %v467_v31, %v466_v23  ;;  %v475_v40 = vadd.f32 %v474_v32, %v473_v24  ;;  %v494_v41 = vadd.f32 %v493_v33, %v492_v25 }
  0xb0   : > { %v482_v42 = vadd.f32 %v481_v36, %v480_v28  ;;  %v489_v43 = vadd.f32 %v488_v37, %v487_v29  ;;  %v507_v44 = vadd.f32 %v986_v48, %v447_v34  ;;  %v509_v45 = vadd.f32 %v986_v48, %v461_v35 }
  0xb1   : > { %v495_v46 = vrot.slane %v494_v41, 1  ;;  %v508_v47 = vadd.f32 %v986_v48, %v454_v38  ;;  %v510_v49 = vadd.f32 %v986_v48, %v468_v39  ;;  %v511_v50 = vadd.f32 %v986_v48, %v475_v40 }
  0xb2   : > { %v512_v51 = vadd.f32 %v986_v48, %v482_v42  ;;  %v513_v52 = vadd.f32 %v986_v48, %v489_v43  ;;  %v763_v53 = vmul.f32 -1.442695, %v507_v44  ;;  %v765_v54 = vmul.f32 -1.442695, %v509_v45 }
  0xb3   : > { %v496_v55 = vadd.f32 %v495_v46, %v494_v41  ;;  %v764_v56 = vmul.f32 -1.442695, %v508_v47  ;;  %v766_v57 = vmul.f32 -1.442695, %v510_v49  ;;  %v767_v58 = vmul.f32 -1.442695, %v511_v50 }
  0xb4   : > { %818 = vpow2.f32 %v763_v53  ;;  %v768_v60 = vmul.f32 -1.442695, %v512_v51  ;;  %v769_v61 = vmul.f32 -1.442695, %v513_v52  ;;  %v892_v8 = vmov 1966171168  }
  0xb5   : > { %v514_v59 = vadd.f32 %v986_v48, %v496_v55  ;;  %820 = vpow2.f32 %v764_v56  ;;  %v576_v9 = vunpack.c.l.s4 %v892_v8 }
  0xb6   : > { %822 = vpow2.f32 %v765_v54 }
  0xb7   : > { %824 = vpow2.f32 %v766_v57  ;;  %v770_v62 = vmul.f32 -1.442695, %v514_v59  ;;  %v577_v17 = vunpack.c.0.s8 %v576_v9 }
  0xb8   : > { %826 = vpow2.f32 %v767_v58 }
  0xb9   : > { %828 = vpow2.f32 %v768_v60  ;;  %v580_v19 = vsub.s32 %v577_v17, %v975_v10 }
  0xba   : > { %830 = vpow2.f32 %v769_v61 }
  0xbb   : > { %832 = vpow2.f32 %v770_v62 }
  0xbe   : > { %v819_v63 = vpop.eup %818 }
  0xbf   : > { %v821_v0 = vpop.eup %820  ;;  %v539_v1 = vadd.f32 1.0, %v819_v63 }
  0xc0   : > { %v823_v2 = vpop.eup %822  ;;  %v540_v3 = vadd.f32 1.0, %v821_v0 }
  0xc1   : > { %v825_v4 = vpop.eup %824  ;;  %v541_v5 = vadd.f32 1.0, %v823_v2  ;;  %834 = vrcp.f32 %v539_v1 }
  0xc2   : > { %v827_v6 = vpop.eup %826  ;;  %v542_v48 = vadd.f32 1.0, %v825_v4  ;;  %836 = vrcp.f32 %v540_v3 }
  0xc3   : > { %v829_v7 = vpop.eup %828  ;;  %v543_v11 = vadd.f32 1.0, %v827_v6  ;;  %838 = vrcp.f32 %v541_v5 }
  0xc4   : > { %v831_v12 = vpop.eup %830  ;;  %v544_v13 = vadd.f32 1.0, %v829_v7  ;;  %840 = vrcp.f32 %v542_v48 }
  0xc5   : > { %v833_v14 = vpop.eup %832  ;;  %v545_v15 = vadd.f32 1.0, %v831_v12  ;;  %842 = vrcp.f32 %v543_v11 }
  0xc6   : > { %v546_v16 = vadd.f32 1.0, %v833_v14  ;;  %844 = vrcp.f32 %v544_v13 }
  0xc7   : > { %846 = vrcp.f32 %v545_v15 }
  0xc8   : > { %848 = vrcp.f32 %v546_v16 }
  0xcb   : > { %v835_v18 = vpop.eup %834 }
  0xcc   : > { %v837_v20 = vpop.eup %836 }
  0xcd   : > { %v839_v21 = vpop.eup %838  ;;  %v571_v22 = vcombine.low %v835_v18, %v837_v20 }
  0xce   : > { %v841_v23 = vpop.eup %840 }
  0xcf   : > { %v843_v24 = vpop.eup %842  ;;  %v572_v25 = vcombine.low %v839_v21, %v841_v23  ;;  %v581_v26 = vrot.slane %v571_v22, %v580_v19 }
  0xd0   : > { %v845_v27 = vpop.eup %844 }
  0xd1   : > { %v847_v28 = vpop.eup %846  ;;  %v573_v29 = vcombine.low %v843_v24, %v845_v27  ;;  %v588_v30 = vrot.slane %v572_v25, %v580_v19 }
  0xd2   : > { %v849_v31 = vpop.eup %848 }
  0xd3   : > { %v574_v32 = vcombine.low %v847_v28, %v849_v31  ;;  %v595_v33 = vrot.slane %v573_v29, %v580_v19  ;;  %v603_v34 = vcombine.low %v581_v26, %v588_v30 }
  0xd5   : > { %v602_v35 = vrot.slane %v574_v32, %v580_v19  ;;  %v611_v37 = vrot.slane %v603_v34, %v580_v19 }
  0xd7   : > { %v604_v36 = vcombine.low %v595_v33, %v602_v35 }
  0xd9   : > { %v618_v10 = vrot.slane %v604_v36, %v580_v19 }
  0xdb   : > { %v619_v38 = vcombine.low %v611_v37, %v618_v10 }
  0xdd   : > { %621 = vst [vmem:[%s359_s30] sm:$0xff] %v619_v38 }
  0xde PF: > { %s18_s27 = sadd.s32 1, %s888_s27   ;;  %s1031_s23 = smov %s880_s25 }
  0xdf   : > { %p15_p7 = scmp.ge.s32.totalorder %s18_s27, 6   ;;  %s1032_s24 = smov %s884_s26 }
  0xe0   : > { %s1033_s25 = smov %s1036_s5  ;;  %s1034_s26 = smov %s1040_s28 }
  0xe1   :  { %17 = sbr.rel (!%p15_p7) target bundleno = 3 (0x3), region = 83 }

// kernel: feat_volume_agg_forward.2
= control target key start
LH: loop header
LB: loop body
LE: loop exit
PB: predicated region body
PF: predicated region fallthrough
CT: control target
= control target key end

     0   :  { %s1609_s24 = smov 0   ;;  %s1611_s25 = smov 0   ;;  %s1862_s0 = inlined_call_operand.vmem [shape: f32[2,32,2048], index: 0, kind: input, shape index: {}]   ;;  %s1863_s1 = inlined_call_operand.vmem [shape: f32[4,32], index: 1, kind: input, shape index: {}]   ;;  %s1864_s2 = inlined_call_operand.vmem [shape: f32[4,1], index: 2, kind: input, shape index: {}]   ;;  %s1865_s3 = inlined_call_operand.vmem [shape: f32[4,4], index: 3, kind: input, shape index: {}]   ;;  %s1866_s4 = inlined_call_operand.vmem [shape: f32[4,1], index: 4, kind: input, shape index: {}]   ;;  %s1867_s5 = inlined_call_operand.vmem [shape: f32[2,4,2048], index: 5, kind: output, shape index: {0}]   ;;  %s1868_s6 = inlined_call_operand.vmem [shape: f32[2,4,2048], index: 6, kind: output, shape index: {1}]   ;;  %s1869_s7 = inlined_call_operand.vmem [shape: f32[2,8,128], index: 7, kind: output, shape index: {2}]  }
   0x1   :  { %s1613_s26 = smov 0   ;;  %s1615_s27 = smov 0  }
   0x2   :  { %s1617_s28 = smov 0   ;;  %s1619_s29 = smov 0  }
   0x3   :  { %s1621_s30 = smov 0  }
   0x4 LB: > { %s27_s8 = sadd.s32 1, %s1554_s28  ;;  %s30_s9 = sadd.s32 1, %s1558_s29  ;;  %s1562_s30 = sphi %s1621_s30, %s18_s30   ;;  %s1558_s29 = sphi %s1619_s29, %s1875_s29   ;;  %s1554_s28 = sphi %s1617_s28, %s1874_s28   ;;  %s1550_s27 = sphi %s1615_s27, %s1873_s27   ;;  %s1546_s26 = sphi %s1613_s26, %s1872_s26   ;;  %s1542_s25 = sphi %s1611_s25, %s1871_s25   ;;  %s1538_s24 = sphi %s1609_s24, %s1870_s24  }
   0x5   : > { %p28_p0 = scmp.ge.s32.totalorder %s27_s8, 2  ;;  %p46_p1 = scmp.ne.s32.totalorder %s1542_s25, %s1538_s24 }
   0x6   : > { %p47_p2 = scmp.eq.s32.totalorder %s1562_s30, 0  ;;  %s39_s13 = sadd.s32 1, %s1542_s25 }
   0x7   : > { %s1877_s8 = smov (%p28_p0, %s27_s8), 0  ;;  %s1879_s9 = smov (!%p28_p0, %s30_s9), %s1558_s29 }
   0x8   : > { %p48_p3 = por %p47_p2, %p46_p1  ;;  %p32_p4 = scmp.ge.s32.totalorder %s1879_s9, 2 }
   0x9   : > { %s35_s10 = ssub.s32 %s1554_s28, %s1877_s8  ;;  %p1381_p6 = scmp.ge.s32.totalorder %s1562_s30, 4 }
   0xa   : > { %s1881_s9 = smov (%p32_p4, %s1879_s9), 0 }
   0xb   : > { %s34_s11 = ssub.s32 %s1558_s29, %s1881_s9  ;;  %250 = sbr.rel (%p1381_p6) target bundleno = 41 (0x29), region = 32 }
   0xc   : > { %s36_s12 = sor.u32 %s35_s10, %s34_s11 }
   0xd   : > { %p37_p5 = scmp.eq.s32.totalorder %s36_s12, 0 }
   0xf   : > { %s1660_s14 = scalar_select %p37_p5, %s1542_s25, %s39_s13  }
  0x12   : > { %253 = sbr.rel (!%p48_p3) target bundleno = 41 (0x29), region = 36  ;;  %s255_s15 = sand.u32 (%p48_p3), 1, %s1542_s25  }
  0x13   : > { %s1383_s16 = sshll.u32 (%p48_p3), %s1554_s28, 3  ;;  %s1382_s17 = sshll.u32 (%p48_p3), %s255_s15, 8 }
  0x14   : > { %s1384_s18 = sshll.u32 (%p48_p3), %s1558_s29, 6  ;;  %s1674_s10 = scalar_lea.vmem (%p48_p3), [#allocation2], %s1382_s17 }
  0x15   : > { %s260_s19 = sadd.s32 (%p48_p3), %s1384_s18, %s1383_s16 }
  0x16   : > { %s1385_s20 = sshll.u32 (%p48_p3), %s260_s19, 3 }
  0x17   : > { %s1669_s23 = scalar_lea.vmem (%p48_p3), %s1862_s0, %s1385_s20 }
  0x18   : > { %v275_v0 = vld [vmem:[%s1669_s23] sm:$0xff] (%p48_p3)  ;;  %v277_v1 = vld [vmem:[%s1669_s23 + $0x8] sm:$0xff] (%p48_p3)  ;;  %v279_v2 = vld [vmem:[%s1669_s23 + $0x10] sm:$0xff] (%p48_p3) }
  0x19   : > { %276 = vst [vmem:[%s1674_s10] sm:$0xff] %v275_v0  ;;  %278 = vst [vmem:[%s1674_s10 + $0x8] sm:$0xff] %v277_v1  ;;  %v281_v3 = vld [vmem:[%s1669_s23 + $0x18] sm:$0xff]  ;;  %v283_v4 = vld [vmem:[%s1669_s23 + $0x20] sm:$0xff] }
  0x1a   : > { %280 = vst [vmem:[%s1674_s10 + $0x10] sm:$0xff] %v279_v2  ;;  %v285_v5 = vld [vmem:[%s1669_s23 + $0x28] sm:$0xff]  ;;  %282 = vst [vmem:[%s1674_s10 + $0x18] sm:$0xff] %v281_v3  ;;  %v287_v6 = vld [vmem:[%s1669_s23 + $0x30] sm:$0xff] }
  0x1b   : > { %284 = vst [vmem:[%s1674_s10 + $0x20] sm:$0xff] %v283_v4  ;;  %286 = vst [vmem:[%s1674_s10 + $0x28] sm:$0xff] %v285_v5  ;;  %v289_v7 = vld [vmem:[%s1669_s23 + $0x38] sm:$0xff]  ;;  %v291_v8 = vld [vmem:[%s1669_s23 + $0x80] sm:$0xff] }
  0x1c   : > { %288 = vst [vmem:[%s1674_s10 + $0x30] sm:$0xff] %v287_v6  ;;  %290 = vst [vmem:[%s1674_s10 + $0x38] sm:$0xff] %v289_v7  ;;  %v293_v9 = vld [vmem:[%s1669_s23 + $0x88] sm:$0xff]  ;;  %v295_v10 = vld [vmem:[%s1669_s23 + $0x90] sm:$0xff] }
  0x1d   : > { %292 = vst [vmem:[%s1674_s10 + $0x40] sm:$0xff] %v291_v8  ;;  %v297_v11 = vld [vmem:[%s1669_s23 + $0x98] sm:$0xff]  ;;  %294 = vst [vmem:[%s1674_s10 + $0x48] sm:$0xff] %v293_v9  ;;  %v299_v12 = vld [vmem:[%s1669_s23 + $0xa0] sm:$0xff] }
  0x1e   : > { %296 = vst [vmem:[%s1674_s10 + $0x50] sm:$0xff] %v295_v10  ;;  %298 = vst [vmem:[%s1674_s10 + $0x58] sm:$0xff] %v297_v11  ;;  %v301_v13 = vld [vmem:[%s1669_s23 + $0xa8] sm:$0xff]  ;;  %v303_v14 = vld [vmem:[%s1669_s23 + $0xb0] sm:$0xff] }
  0x1f   : > { %300 = vst [vmem:[%s1674_s10 + $0x60] sm:$0xff] %v299_v12  ;;  %302 = vst [vmem:[%s1674_s10 + $0x68] sm:$0xff] %v301_v13  ;;  %v305_v15 = vld [vmem:[%s1669_s23 + $0xb8] sm:$0xff]  ;;  %v307_v16 = vld [vmem:[%s1669_s23 + $0x100] sm:$0xff] }
  0x20   : > { %304 = vst [vmem:[%s1674_s10 + $0x70] sm:$0xff] %v303_v14  ;;  %v309_v17 = vld [vmem:[%s1669_s23 + $0x108] sm:$0xff]  ;;  %306 = vst [vmem:[%s1674_s10 + $0x78] sm:$0xff] %v305_v15  ;;  %v311_v18 = vld [vmem:[%s1669_s23 + $0x110] sm:$0xff] }
  0x21   : > { %308 = vst [vmem:[%s1674_s10 + $0x80] sm:$0xff] %v307_v16  ;;  %310 = vst [vmem:[%s1674_s10 + $0x88] sm:$0xff] %v309_v17  ;;  %v313_v19 = vld [vmem:[%s1669_s23 + $0x118] sm:$0xff]  ;;  %v315_v20 = vld [vmem:[%s1669_s23 + $0x120] sm:$0xff] }
  0x22   : > { %312 = vst [vmem:[%s1674_s10 + $0x90] sm:$0xff] %v311_v18  ;;  %314 = vst [vmem:[%s1674_s10 + $0x98] sm:$0xff] %v313_v19  ;;  %v317_v21 = vld [vmem:[%s1669_s23 + $0x128] sm:$0xff]  ;;  %v319_v22 = vld [vmem:[%s1669_s23 + $0x130] sm:$0xff] }
  0x23   : > { %316 = vst [vmem:[%s1674_s10 + $0xa0] sm:$0xff] %v315_v20  ;;  %v321_v23 = vld [vmem:[%s1669_s23 + $0x138] sm:$0xff]  ;;  %318 = vst [vmem:[%s1674_s10 + $0xa8] sm:$0xff] %v317_v21  ;;  %v323_v24 = vld [vmem:[%s1669_s23 + $0x180] sm:$0xff] }
  0x24   : > { %320 = vst [vmem:[%s1674_s10 + $0xb0] sm:$0xff] %v319_v22  ;;  %322 = vst [vmem:[%s1674_s10 + $0xb8] sm:$0xff] %v321_v23  ;;  %v325_v25 = vld [vmem:[%s1669_s23 + $0x188] sm:$0xff]  ;;  %v327_v26 = vld [vmem:[%s1669_s23 + $0x190] sm:$0xff] }
  0x25   : > { %324 = vst [vmem:[%s1674_s10 + $0xc0] sm:$0xff] %v323_v24  ;;  %326 = vst [vmem:[%s1674_s10 + $0xc8] sm:$0xff] %v325_v25  ;;  %v329_v27 = vld [vmem:[%s1669_s23 + $0x198] sm:$0xff]  ;;  %v331_v28 = vld [vmem:[%s1669_s23 + $0x1a0] sm:$0xff] }
  0x26   : > { %328 = vst [vmem:[%s1674_s10 + $0xd0] sm:$0xff] %v327_v26  ;;  %v333_v29 = vld [vmem:[%s1669_s23 + $0x1a8] sm:$0xff]  ;;  %330 = vst [vmem:[%s1674_s10 + $0xd8] sm:$0xff] %v329_v27  ;;  %v335_v30 = vld [vmem:[%s1669_s23 + $0x1b0] sm:$0xff] }
  0x27   : > { %332 = vst [vmem:[%s1674_s10 + $0xe0] sm:$0xff] %v331_v28  ;;  %334 = vst [vmem:[%s1674_s10 + $0xe8] sm:$0xff] %v333_v29  ;;  %v337_v31 = vld [vmem:[%s1669_s23 + $0x1b8] sm:$0xff] }
  0x28   : > { %336 = vst [vmem:[%s1674_s10 + $0xf0] sm:$0xff] %v335_v30  ;;  %338 = vst [vmem:[%s1674_s10 + $0xf8] sm:$0xff] %v337_v31 }
  0x29 PF: > { %p1386_p7 = scmp.ge.s32.totalorder %s1562_s30, 1  ;;  %p343_p8 = scmp.lt.s32.totalorder %s1562_s30, 5 }
  0x2b   : > { %p344_p9 = pnand %p1386_p7, %p343_p8 }
  0x2c   : > { %s350_s11 = sand.u32 (!%p344_p9), 1, %s1538_s24   ;;  %v1564_v32 = vmov (!%p344_p9), 0.0   ;;  %v456_v33 = vld [vmem:[%s1864_s2] sm:$0xf] (!%p344_p9)  ;;  %v1565_v34 = vmov (!%p344_p9), 0   ;;  %vm462_vm0 = vcmask (!%p344_p9), 261120  }
  0x2d   : > { %347 = sbr.rel (%p344_p9) target bundleno = 543 (0x21f), region = 59  ;;  %s1387_s12 = sshll.u32 (!%p344_p9), %s350_s11, 8  ;;  %530 = vmatprep.mubr.f32.mxu0 (!%p344_p9), %v1564_v32  ;;  %601 = vmatprep.mubr.f32.mxu1 (!%p344_p9), %v1564_v32  ;;  %v751_v38 = vld [vmem:[%s1866_s4] sm:$0xf] (!%p344_p9)  ;;  %vm761_vm1 = vcmask (!%p344_p9), 1043456   ;;  %vm757_vm2 = vcmask (!%p344_p9), 31744  }
  0x2e   : > { %1507 = vset.pattern.permute.xlu0 (!%p344_p9), %v1565_v34  ;;  %s1745_s16 = scalar_lea.vmem (!%p344_p9), [#allocation2], %s1387_s12  ;;  %v455_v62 = vld [vmem:[%s1863_s1] sm:$0xf] (!%p344_p9)  ;;  %p400_p10 = scmp.lt.s32.totalorder (!%p344_p9), %s1550_s27, 1 }
  0x2f   : > { %v424_v35 = vld [vmem:[%s1745_s16 + $0x8] sm:$0xff] (!%p344_p9)  ;;  %v426_v37 = vld [vmem:[%s1745_s16 + $0x18] sm:$0xff] (!%p344_p9)  ;;  %459 = vperm.xlu0 (!%p344_p9), %1507, %v456_v33   ;;  %v423_v41 = vld [vmem:[%s1745_s16] sm:$0xff] (!%p344_p9)  ;;  %s1388_s10 = sshll.u32 (!%p344_p9), %s1546_s26, 3  ;;  %p1411_p12 = scmp.ne.s32.totalorder (!%p344_p9), %s1546_s26, 0 }
  0x30   : > { %v432_v36 = vld [vmem:[%s1745_s16 + $0x48] sm:$0xff] (!%p344_p9)  ;;  %v434_v40 = vld [vmem:[%s1745_s16 + $0x58] sm:$0xff] (!%p344_p9)  ;;  %v431_v42 = vld [vmem:[%s1745_s16 + $0x40] sm:$0xff] (!%p344_p9)  ;;  %p402_p11 = scmp.lt.s32.totalorder (!%p344_p9), %s1388_s10, 15 }
  0x31   : > { %v1414_v39 = vpack.c.bf16 (!%p344_p9), %v432_v36, %v424_v35  ;;  %v1422_v43 = vpack.c.bf16 (!%p344_p9), %v434_v40, %v426_v37  ;;  %v1416_v44 = vpack.c.bf16 (!%p344_p9), %v431_v42, %v423_v41  ;;  %v425_v45 = vld [vmem:[%s1745_s16 + $0x10] sm:$0xff] (!%p344_p9)  ;;  %v440_v47 = vld [vmem:[%s1745_s16 + $0x88] sm:$0xff] (!%p344_p9)  ;;  %v442_v50 = vld [vmem:[%s1745_s16 + $0x98] sm:$0xff] (!%p344_p9) }
  0x32   : > { %v433_v46 = vld [vmem:[%s1745_s16 + $0x50] sm:$0xff] (!%p344_p9)  ;;  %v448_v49 = vld [vmem:[%s1745_s16 + $0xc8] sm:$0xff] (!%p344_p9)  ;;  %v450_v51 = vld [vmem:[%s1745_s16 + $0xd8] sm:$0xff] (!%p344_p9) }
  0x33   : > { %1415 = vmatprep.subr.bf16.mxu0 (!%p344_p9), %v1414_v39  ;;  %v1424_v48 = vpack.c.bf16 (!%p344_p9), %v433_v46, %v425_v45  ;;  %1423 = vmatprep.subr.bf16.mxu1 (!%p344_p9), %v1422_v43  ;;  %v1418_v52 = vpack.c.bf16 (!%p344_p9), %v448_v49, %v440_v47  ;;  %v1426_v53 = vpack.c.bf16 (!%p344_p9), %v450_v51, %v442_v50  ;;  %v439_v54 = vld [vmem:[%s1745_s16 + $0x80] sm:$0xff] (!%p344_p9)  ;;  %v441_v56 = vld [vmem:[%s1745_s16 + $0x90] sm:$0xff] (!%p344_p9)  ;;  %v428_v59 = vld [vmem:[%s1745_s16 + $0x28] sm:$0xff] (!%p344_p9) }
  0x34   : > { %1417 = vmatpush1.bf16.msra.mxu0 %v1416_v44  ;;  %v447_v55 = vld [vmem:[%s1745_s16 + $0xc0] sm:$0xff]  ;;  %v449_v58 = vld [vmem:[%s1745_s16 + $0xd0] sm:$0xff]  ;;  %v436_v60 = vld [vmem:[%s1745_s16 + $0x68] sm:$0xff]  ;;  %754 = vperm.xlu0 %1507, %v751_v38   ;;  %s1883_s27 = smov (!%p400_p10, %s1550_s27), 1  ;;  %s1885_s10 = smov (!%p402_p11, %s1388_s10), 15 }
  0x35   : > { %1425 = vmatpush1.bf16.msra.mxu1 %v1424_v48  ;;  %v1420_v57 = vpack.c.bf16 %v447_v55, %v439_v54  ;;  %1419 = vmatprep.subr.bf16.mxu0 %v1418_v52  ;;  %v1428_v61 = vpack.c.bf16 %v449_v58, %v441_v56  ;;  %v1430_v63 = vpack.c.bf16 %v436_v60, %v428_v59  ;;  %v430_v0 = vld [vmem:[%s1745_s16 + $0x38] sm:$0xff]  ;;  %v427_v2 = vld [vmem:[%s1745_s16 + $0x20] sm:$0xff]  ;;  %v429_v5 = vld [vmem:[%s1745_s16 + $0x30] sm:$0xff]  ;;  %s1394_s20 = sshll.u32 %s1883_s27, 3  ;;  %s1389_s11 = sshll.u32 %s1883_s27, 4 }
  0x36   : > { %1427 = vmatprep.subr.bf16.mxu1 %v1426_v53  ;;  %v438_v1 = vld [vmem:[%s1745_s16 + $0x78] sm:$0xff]  ;;  %v435_v4 = vld [vmem:[%s1745_s16 + $0x60] sm:$0xff]  ;;  %v437_v6 = vld [vmem:[%s1745_s16 + $0x70] sm:$0xff]  ;;  %s1798_s23 = scalar_lea.vmem %s1869_s7, %s1394_s20  ;;  %s1801_s12 = sadd.s32 %s1389_s11, %s1885_s10 }
  0x37   : > { %v1438_v3 = vpack.c.bf16 %v438_v1, %v430_v0  ;;  %v1432_v7 = vpack.c.bf16 %v435_v4, %v427_v2  ;;  %v444_v8 = vld [vmem:[%s1745_s16 + $0xa8] sm:$0xff]  ;;  %v446_v10 = vld [vmem:[%s1745_s16 + $0xb8] sm:$0xff]  ;;  %v1440_v11 = vpack.c.bf16 %v437_v6, %v429_v5  ;;  %v443_v14 = vld [vmem:[%s1745_s16 + $0xa0] sm:$0xff]  ;;  %s1390_s13 = sshll.u32 %s1801_s12, 2  ;;  %v1566_v0 = vmov (!%p1411_p12), 0.0  }
  0x38   : > { %1421 = vmatpush1.bf16.msra.mxu0 %v1420_v57  ;;  %v452_v9 = vld [vmem:[%s1745_s16 + $0xe8] sm:$0xff]  ;;  %v454_v13 = vld [vmem:[%s1745_s16 + $0xf8] sm:$0xff]  ;;  %v451_v15 = vld [vmem:[%s1745_s16 + $0xe0] sm:$0xff]  ;;  %s1809_s24 = scalar_lea.vmem %s1867_s5, %s1390_s13  ;;  %s417_s20 = scalar_lea.vmem %s1868_s6, %s1390_s13  ;;  %1106 = vst [vmem:[%s1798_s23] sm:$0xff] (!%p1411_p12), %v1566_v0 }
  0x39   : > { %1429 = vmatpush1.bf16.msra.mxu1 %v1428_v61  ;;  %1431 = vmatprep.subr.bf16.mxu0 %v1430_v63  ;;  %v1434_v12 = vpack.c.bf16 %v452_v9, %v444_v8  ;;  %v1442_v16 = vpack.c.bf16 %v454_v13, %v446_v10  ;;  %v445_v17 = vld [vmem:[%s1745_s16 + $0xb0] sm:$0xff]  ;;  %v1436_v19 = vpack.c.bf16 %v451_v15, %v443_v14  ;;  %v750_v30 = vld [vmem:[%s1865_s3] sm:$0xf] }
  0x3a   : > { %1439 = vmatprep.subr.bf16.mxu1 %v1438_v3  ;;  %v453_v18 = vld [vmem:[%s1745_s16 + $0xf0] sm:$0xff] }
  0x3b   : > { %1395 = vmatmul.mubr.msk.f32.vlgmr.msra.gmra.mrb[0].mxu0 %vm462_vm0, %v455_v62  ;;  %v1444_v20 = vpack.c.bf16 %v453_v18, %v445_v17 }
  0x3c   : > { %1396 = vmatmul.mubr.msk.f32.vlgmr.msra.gmra.mrb[0].mxu1 %vm462_vm0, %v455_v62  ;;  %1433 = vmatpush1.bf16.msra.mxu0 %v1432_v7 }
  0x3d   : > { %1441 = vmatpush1.bf16.msra.mxu1 %v1440_v11  ;;  %1435 = vmatprep.subr.bf16.mxu0 %v1434_v12 }
  0x3e   : > { %1443 = vmatprep.subr.bf16.mxu1 %v1442_v16  ;;  %672 = vmatprep.mubr.f32.mxu0 %v1564_v32 }
  0x3f   : > { %743 = vmatprep.mubr.f32.mxu1 %v1564_v32 }
  0x40   : > { %1437 = vmatpush1.bf16.msra.mxu0 %v1436_v19 }
  0x41   : > { %1445 = vmatpush1.bf16.msra.mxu1 %v1444_v20 }
  0x43   : > { %1397 = vmatmul.mubr.msk.f32.vlgmr.msra.gmra.mrb[2].mxu0 %vm462_vm0, %v455_v62 }
  0x44   : > { %1398 = vmatmul.mubr.msk.f32.vlgmr.msra.gmra.mrb[2].mxu1 %vm462_vm0, %v455_v62  ;;  %850 = vmatprep.mubr.f32.mxu0 %v1564_v32 }
  0x45   : > { %921 = vmatprep.mubr.f32.mxu1 %v1564_v32 }
  0xae   : > { %v460_v21 = vpop.permute.xlu0 %459 }
 0x10e   : > { %v532_v22 = vpop.f32.mrb[0].mxu0 }
 0x10f   : > { %v603_v23 = vpop.f32.mrb[0].mxu1  ;;  %v533_v24 = vadd.f32 %v532_v22, %v460_v21  ;;  %v534_v25 = vpop.f32.mrb[1].mxu0 }
 0x110   : > { %v535_v26 = vadd.f32 %v534_v25, %v460_v21  ;;  %v604_v27 = vadd.f32 %v603_v23, %v460_v21  ;;  %v605_v28 = vpop.f32.mrb[1].mxu1 }
 0x111   : > { %v606_v29 = vadd.f32 %v605_v28, %v460_v21 }
 0x112   : > { %v1070_v31 = vcombine.low %v533_v24, %v535_v26  ;;  %1399 = vmatprep.subr.msk.mxu0 %vm761_vm1, %v535_v26 }
 0x113   : > { %v1071_v33 = vcombine.low %v604_v27, %v606_v29  ;;  %1402 = vmatprep.subr.msk.mxu1 %vm761_vm1, %v606_v29  ;;  %1400 = vmatpush1.msk.msra.mxu0 %vm761_vm1, %v533_v24 }
 0x114   : > { %1078 = vst [vmem:[%s1809_s24] sm:$0xff] %v1070_v31  ;;  %1403 = vmatpush1.msk.msra.mxu1 %vm761_vm1, %v604_v27  ;;  %1401 = vmatmul.mubr.msk.f32.vlgmr.msra.gmra.mrb[4].mxu0 %vm757_vm2, %v750_v30 }
 0x115   : > { %1079 = vst [vmem:[%s1809_s24 + $0x8] sm:$0xff] %v1071_v33  ;;  %1404 = vmatmul.mubr.msk.f32.vlgmr.msra.gmra.mrb[4].mxu1 %vm757_vm2, %v750_v30  ;;  %992 = vmatprep.mubr.f32.mxu0 %v1564_v32 }
 0x116   : > { %v674_v34 = vpop.f32.mrb[2].mxu0  ;;  %1063 = vmatprep.mubr.f32.mxu1 %v1564_v32  ;;  %v755_v32 = vpop.permute.xlu0 %754 }
 0x117   : > { %v675_v35 = vadd.f32 %v674_v34, %v460_v21  ;;  %v745_v36 = vpop.f32.mrb[2].mxu1  ;;  %v676_v37 = vpop.f32.mrb[3].mxu0 }
 0x118   : > { %v746_v38 = vadd.f32 %v745_v36, %v460_v21  ;;  %v677_v39 = vadd.f32 %v676_v37, %v460_v21  ;;  %v747_v40 = vpop.f32.mrb[3].mxu1 }
 0x119   : > { %v748_v41 = vadd.f32 %v747_v40, %v460_v21 }
 0x11a   : > { %v1072_v42 = vcombine.low %v675_v35, %v677_v39  ;;  %1405 = vmatprep.subr.msk.mxu0 %vm761_vm1, %v677_v39 }
 0x11b   : > { %v1073_v43 = vcombine.low %v746_v38, %v748_v41  ;;  %1408 = vmatprep.subr.msk.mxu1 %vm761_vm1, %v748_v41  ;;  %1406 = vmatpush1.msk.msra.mxu0 %vm761_vm1, %v675_v35 }
 0x11c   : > { %1080 = vst [vmem:[%s1809_s24 + $0x10] sm:$0xff] %v1072_v42  ;;  %1409 = vmatpush1.msk.msra.mxu1 %vm761_vm1, %v746_v38  ;;  %1407 = vmatmul.mubr.msk.f32.vlgmr.msra.gmra.mrb[6].mxu0 %vm757_vm2, %v750_v30 }
 0x11d   : > { %1081 = vst [vmem:[%s1809_s24 + $0x18] sm:$0xff] %v1073_v43  ;;  %1410 = vmatmul.mubr.msk.f32.vlgmr.msra.gmra.mrb[6].mxu1 %vm757_vm2, %v750_v30 }
 0x1e7   : > { %v852_v44 = vpop.f32.mrb[4].mxu0 }
 0x1e8   : > { %v853_v45 = vadd.f32 %v852_v44, %v755_v32  ;;  %v923_v46 = vpop.f32.mrb[4].mxu1  ;;  %v854_v47 = vpop.f32.mrb[5].mxu0 }
 0x1e9   : > { %v924_v48 = vadd.f32 %v923_v46, %v755_v32  ;;  %v855_v49 = vadd.f32 %v854_v47, %v755_v32  ;;  %v925_v50 = vpop.f32.mrb[5].mxu1 }
 0x1ea   : > { %v926_v51 = vadd.f32 %v925_v50, %v755_v32 }
 0x1eb   : > { %v1090_v52 = vcombine.low %v853_v45, %v855_v49 }
 0x1ec   : > { %v1091_v53 = vcombine.low %v924_v48, %v926_v51 }
 0x1ed   : > { %1098 = vst [vmem:[%s417_s20] sm:$0xff] %v1090_v52 }
 0x1ee   : > { %1099 = vst [vmem:[%s417_s20 + $0x8] sm:$0xff] %v1091_v53 }
 0x1ef   : > { %v994_v54 = vpop.f32.mrb[6].mxu0 }
 0x1f0   : > { %v995_v55 = vadd.f32 %v994_v54, %v755_v32  ;;  %v1065_v56 = vpop.f32.mrb[6].mxu1  ;;  %v996_v57 = vpop.f32.mrb[7].mxu0  ;;  %1105 = sbr.rel (%p1411_p12) target bundleno = 503 (0x1f7), region = 67 }
 0x1f1   : > { %v1066_v58 = vadd.f32 %v1065_v56, %v755_v32  ;;  %v997_v59 = vadd.f32 %v996_v57, %v755_v32  ;;  %v1067_v60 = vpop.f32.mrb[7].mxu1 }
 0x1f2   : > { %v1068_v61 = vadd.f32 %v1067_v60, %v755_v32 }
 0x1f3   : > { %v1092_v62 = vcombine.low %v995_v55, %v997_v59 }
 0x1f4   : > { %v1093_v63 = vcombine.low %v1066_v58, %v1068_v61 }
 0x1f5   : > { %1100 = vst [vmem:[%s417_s20 + $0x10] sm:$0xff] %v1092_v62 }
 0x1f6   : > { %1101 = vst [vmem:[%s417_s20 + $0x18] sm:$0xff] %v1093_v63 }
 0x1f7 PF: > { %v1111_v1 = vlaneseq  ;;  %v1567_v2 = vmov 1983009808   ;;  %v1107_v4 = vcombine.low %v853_v45, %v924_v48  ;;  %v1568_v6 = vmov 1934713408   ;;  %v1201_v53 = vld [vmem:[%s1798_s23] sm:$0xff] }
 0x1f8   : > { %v1109_v3 = vunpack.c.l.s4 %v1567_v2  ;;  %v1142_v7 = vunpack.c.l.s4 %v1568_v6  ;;  %v1115_v9 = vcombine.low %v855_v49, %v926_v51  ;;  %v1123_v10 = vcombine.low %v995_v55, %v1066_v58 }
 0x1f9   : > { %v1112_v5 = vshrl.u32 %v1111_v1, 7  ;;  %v1131_v11 = vcombine.low %v997_v59, %v1068_v61  ;;  %vm1197_vm3 = vcmask 1040384   ;;  %vm1199_vm4 = vcmask 1041408  }
 0x1fa   : > { %v1110_v8 = vunpack.c.0.s8 %v1109_v3  ;;  %v1143_v12 = vunpack.c.0.s8 %v1142_v7 }
 0x1fc   : > { %v1113_v13 = vsub.s32 %v1110_v8, %v1112_v5  ;;  %v1146_v14 = vsub.s32 %v1143_v12, %v1112_v5 }
 0x1fe   : > { %v1114_v15 = vrot.slane %v1107_v4, %v1113_v13  ;;  %v1122_v16 = vrot.slane %v1115_v9, %v1113_v13  ;;  %v1130_v17 = vrot.slane %v1123_v10, %v1113_v13  ;;  %v1138_v18 = vrot.slane %v1131_v11, %v1113_v13 }
 0x200   : > { %v1139_v19 = vcombine.low %v1114_v15, %v1122_v16  ;;  %v1140_v20 = vcombine.high %v1114_v15, %v1122_v16  ;;  %v1155_v21 = vcombine.low %v1130_v17, %v1138_v18  ;;  %v1156_v22 = vcombine.high %v1130_v17, %v1138_v18 }
 0x202   : > { %v1147_v23 = vrot.slane %v1139_v19, %v1146_v14  ;;  %v1154_v24 = vrot.slane %v1140_v20, %v1146_v14  ;;  %v1163_v25 = vrot.slane %v1155_v21, %v1146_v14  ;;  %v1170_v26 = vrot.slane %v1156_v22, %v1146_v14 }
 0x204   : > { %v1171_v27 = vcombine.low %v1147_v23, %v1163_v25  ;;  %v1172_v28 = vcombine.high %v1147_v23, %v1163_v25  ;;  %v1173_v29 = vcombine.low %v1154_v24, %v1170_v26  ;;  %v1174_v30 = vcombine.high %v1154_v24, %v1170_v26 }
 0x206   : > { %v1175_v31 = vadd.f32 %v1172_v28, %v1171_v27  ;;  %v1184_v33 = vmul.f32 %v1171_v27, %v1171_v27  ;;  %v1185_v34 = vmul.f32 %v1172_v28, %v1172_v28  ;;  %v1186_v35 = vmul.f32 %v1173_v29, %v1173_v29 }
 0x207   : > { %v1187_v37 = vmul.f32 %v1174_v30, %v1174_v30 }
 0x208   : > { %v1176_v36 = vadd.f32 %v1175_v31, %v1173_v29  ;;  %v1188_v38 = vadd.f32 %v1185_v34, %v1184_v33 }
 0x20a   : > { %v1177_v39 = vadd.f32 %v1176_v36, %v1174_v30  ;;  %v1189_v40 = vadd.f32 %v1188_v38, %v1186_v35 }
 0x20c   : > { %v1178_v41 = vrot.slane %v1177_v39, 4  ;;  %v1190_v42 = vadd.f32 %v1189_v40, %v1187_v37 }
 0x20e   : > { %v1179_v43 = vadd.f32 %v1178_v41, %v1177_v39  ;;  %v1191_v32 = vrot.slane %v1190_v42, 4 }
 0x210   : > { %v1180_v44 = vrot.slane %v1179_v43, 2  ;;  %v1192_v45 = vadd.f32 %v1191_v32, %v1190_v42 }
 0x212   : > { %v1181_v46 = vadd.f32 %v1180_v44, %v1179_v43  ;;  %v1193_v47 = vrot.slane %v1192_v45, 2 }
 0x214   : > { %v1182_v48 = vrot.slane %v1181_v46, 1  ;;  %v1194_v49 = vadd.f32 %v1193_v47, %v1192_v45 }
 0x216   : > { %v1183_v50 = vadd.f32 %v1182_v48, %v1181_v46  ;;  %v1195_v51 = vrot.slane %v1194_v49, 1 }
 0x218   : > { %v1196_v52 = vadd.f32 %v1195_v51, %v1194_v49 }
 0x21a   : > { %v1198_v54 = vsel %vm1197_vm3, %v1183_v50, %v1196_v52 }
 0x21b   : > { %v1200_v55 = vsel %vm1199_vm4, %v1198_v54, 0.0 }
 0x21c   : > { %v1202_v56 = vadd.f32 %v1201_v53, %v1200_v55 }
 0x21e   : > { %1203 = vst [vmem:[%s1798_s23] sm:$0xff] %v1202_v56 }
 0x21f PF: > { %s18_s30 = sadd.s32 1, %s1562_s30   ;;  %s1870_s24 = smov %s1542_s25 }
 0x220   : > { %p15_p13 = scmp.ge.s32.totalorder %s18_s30, 6   ;;  %s1871_s25 = smov %s1660_s14 }
 0x221   : > { %s1872_s26 = smov %s1554_s28  ;;  %s1873_s27 = smov %s1558_s29 }
 0x222   : > { %s1874_s28 = smov %s1877_s8  ;;  %s1875_s29 = smov %s1881_s9 }
 0x223   :  { %17 = sbr.rel (!%p15_p13) target bundleno = 4 (0x4), region = 126 }

</bundles_post_ra>
